<compile_context>
chip_gen: v7x
topology: tpu7x:2x2x1
jax: 0.10.0
libtpu: 0.0.40
codegen_flags: <defaults>
</compile_context>

<pallas_src>
import jax
import jax.numpy as jnp
from jax.experimental import pallas as pl
from jax.experimental.pallas import tpu as pltpu


def _copy_kernel(x_ref, o_ref):
    # Identity copy of the current lane-dense tile.
    o_ref[...] = x_ref[...]


def _resolve_shape(batch, total_per_batch, shape):
    """Resolve the torch.view target shape (shape[0]==0 keeps batch, -1 allowed)."""
    assert shape[0] == 0
    tail = list(shape[1:])
    if -1 in tail:
        assert tail.count(-1) == 1
        known = 1
        for d in tail:
            if d != -1:
                known *= d
        assert total_per_batch % known == 0
        tail[tail.index(-1)] = total_per_batch // known
    else:
        prod = 1
        for d in tail:
            prod *= d
        assert prod == total_per_batch, "view shape incompatible with input"
    return (batch, *tail)


_LANE = 128
_SUBLANE = 8
_MAX_LANE_WIDTH = 32768          # widest lane-dense row we will form
# ~2 MiB per operand tile: amortizes the ~0.35 us per-grid-step overhead
# (>85% of HBM roofline) while 2 in-bufs + 2 out-bufs stay at ~8 MiB VMEM,
# under every generation's scoped default (16 MiB v5e, 32 MiB v6e/v7x).
_TILE_BYTES = 2 * 1024 * 1024


def _choose_slab(total, itemsize):
    """Pick a lane-dense 2-D view (R, C) of the flat element stream + row tile.

    Returns None if `total` is not a multiple of 128 (caller falls back to a
    whole-array single-block copy, which has no (8,128) divisibility needs).
    """
    if total % _LANE != 0:
        return None
    # Largest multiple of 128 (capped) that evenly divides the element count:
    # maximizes unmasked lane-dense store width.  Trace-time Python loop,
    # at most 256 iterations.
    C = _LANE
    cap = min(_MAX_LANE_WIDTH, total)
    cand = (cap // _LANE) * _LANE
    while cand >= _LANE:
        if total % cand == 0:
            C = cand
            break
        cand -= _LANE
    R = total // C
    if R <= _SUBLANE:
        block_rows = R                        # full extent on the sublane dim
    else:
        rows = max(_SUBLANE, _TILE_BYTES // (C * itemsize))
        rows = (rows // _SUBLANE) * _SUBLANE  # keep (8,128) alignment
        block_rows = min(rows, (R // _SUBLANE) * _SUBLANE)
    return R, C, block_rows


def pallas_reshape(x, shape):
    """Reproduces Reshape(shape).forward(x) for a contiguous NCHW input."""
    B = x.shape[0]
    N = 1
    for d in x.shape[1:]:
        N *= d
    out_shape = _resolve_shape(B, N, shape)

    total = B * N
    itemsize = jnp.dtype(x.dtype).itemsize
    slab = _choose_slab(total, itemsize)

    if slab is None:
        # Ragged (non-128-multiple) element counts: whole-array single block.
        # TODO(synk): a huge ragged tensor would want a cdiv grid with a
        # masked edge tile instead of one full-array VMEM block.
        x2 = x.reshape(1, total)
        y2 = pl.pallas_call(
            _copy_kernel,
            out_shape=jax.ShapeDtypeStruct((1, total), x.dtype),
        )(x2)
        return y2.reshape(out_shape)

    R, C, block_rows = slab
    # Row-major flatten: same memory order torch.view assumes; free in XLA.
    x2 = x.reshape(R, C)
    grid = (pl.cdiv(R, block_rows),)

    y2 = pl.pallas_call(
        _copy_kernel,
        out_shape=jax.ShapeDtypeStruct((R, C), x.dtype),
        grid_spec=pltpu.PrefetchScalarGridSpec(
            num_scalar_prefetch=0,
            grid=grid,
            in_specs=[pl.BlockSpec((block_rows, C), lambda i: (i, 0))],
            out_specs=pl.BlockSpec((block_rows, C), lambda i: (i, 0)),
        ),
        compiler_params=pltpu.CompilerParams(
            # Mem-bound copy on one parallel axis: lets v7x shard the copy
            # across its 2 TensorCores; neutral on v5e/v6e.
            dimension_semantics=("parallel",),
        ),
    )(x2)

    # Free shape re-interpretation (matches torch .view on contiguous data).
    return y2.reshape(out_shape)


if __name__ == "__main__":
    key = jax.random.PRNGKey(0)

    # Small NCHW input: batch=2, channels=4, spatial=16x16 -> 1024 elems/batch.
    x = jax.random.normal(key, (2, 4, 16, 16), dtype=jnp.float32)
    target_shape = (0, 8, 128)
    y = jax.block_until_ready(pallas_reshape(x, target_shape))
    ref = x.reshape(x.shape[0], 8, 128)
    assert y.shape == (2, 8, 128), y.shape
    assert y.dtype == x.dtype
    assert jnp.array_equal(y, ref)

    # Lane-unaligned per-batch size + "-1" target: exercises the
    # whole-array fallback path (no N % 128 restriction).
    x2 = jax.random.normal(jax.random.PRNGKey(1), (2, 3, 13, 13), dtype=jnp.float32)
    y2 = jax.block_until_ready(pallas_reshape(x2, (0, -1)))
    ref2 = x2.reshape(2, 3 * 13 * 13)
    assert y2.shape == (2, 507), y2.shape
    assert jnp.array_equal(y2, ref2)

    # bf16 coverage (sub-32-bit sublane packing) through the lane-dense path.
    x3 = jax.random.normal(jax.random.PRNGKey(2), (2, 4, 16, 16)).astype(jnp.bfloat16)
    y3 = jax.block_until_ready(pallas_reshape(x3, (0, -1)))
    ref3 = x3.reshape(2, 1024)
    assert y3.shape == (2, 1024), y3.shape
    assert y3.dtype == jnp.bfloat16
    assert jnp.array_equal(y3, ref3)

    print("KERNEL_OK")
</pallas_src>

<mosaic_0001>
module attributes {stable_mosaic.version = 11 : i64} {
  func.func @_copy_kernel(%arg0: i32, %arg1: memref<1x2048xf32, #tpu.memory_space<vmem>>, %arg2: memref<1x2048xf32, #tpu.memory_space<vmem>>) attributes {dimension_semantics = [#tpu.dimension_semantics<parallel>], iteration_bounds = array<i64: 1>, scalar_prefetch = 0 : i64, scratch_operands = 0 : i64, tpu.core_type = #tpu.core_type<tc>, window_params = [{transform_indices = @transform_0, window_bounds = array<i64: 1, 2048>}, {transform_indices = @transform_1, window_bounds = array<i64: 1, 2048>}]} {
    %c0 = arith.constant 0 : index
    %c0_0 = arith.constant 0 : index
    %0 = vector.load %arg1[%c0, %c0_0] : memref<1x2048xf32, #tpu.memory_space<vmem>>, vector<1x2048xf32>
    %c0_1 = arith.constant 0 : index
    %c0_2 = arith.constant 0 : index
    %1 = vector.load %arg2[%c0_1, %c0_2] : memref<1x2048xf32, #tpu.memory_space<vmem>>, vector<1x2048xf32>
    tpu.vector_store %arg2[%c0_1, %c0_2], %0 {strides = array<i32>} : memref<1x2048xf32, #tpu.memory_space<vmem>>, vector<1x2048xf32>,
    return
  }
  func.func @transform_0(%arg0: i32) -> (i32, i32) {
    %c0_i32 = arith.constant 0 : i32
    %c0_i32_0 = arith.constant 0 : i32
    return %arg0, %c0_i32 : i32, i32
  }
  func.func @transform_1(%arg0: i32) -> (i32, i32) {
    %c0_i32 = arith.constant 0 : i32
    %c0_i32_0 = arith.constant 0 : i32
    return %arg0, %c0_i32 : i32, i32
  }
}

</mosaic_0001>

<bundles_post_ra>
// kernel: tpu_custom_call.1
= control target key start
LH: loop header
LB: loop body
LE: loop exit
PB: predicated region body
PF: predicated region fallthrough
CT: control target
= control target key end

     0   :  { %6 = vsyncpa [#allocation3], 0  ;;  %s126_s0 = inlined_call_operand.hbm [shape: f32[1,2048], index: 0, kind: input, shape index: {}]   ;;  %s127_s1 = inlined_call_operand.hbm [shape: f32[1,2048], index: 1, kind: output, shape index: {}]  }
   0x1   :  { %7 = vsyncpa [#allocation4], 0  ;;  %s90_s6 = smov [#allocation2]   ;;  %s42_s10 = scalar_lea.hbm %s126_s0, 256 }
   0x2   :  { %s14_s7 = sshll.u32 %s90_s6, 4  ;;  %p43_p0 = scmp.ne.s32.totalorder %s126_s0, %s42_s10  ;;  %s15_s7 = int_to_ptr.vmem [resolvable:$true] %s14_s7 }
   0x3   :  { %p46_p1 = scmp.lt.u32.totalorder %s42_s10, %s126_s0 }
   0x5   :  { %p48_p2 = pnand %p46_p1, %p43_p0 }
   0x7   :  { %51 = shalt.err (!%p48_p2)
}
   0x8   :  { %s52_s15 = scalar_lea.vmem %s15_s7, 256  ;;  %p57_p4 = scmp.lt.s32.totalorder %s15_s7, %s15_s7 }
   0x9   :  { %p53_p3 = scmp.ne.s32.totalorder %s15_s7, %s52_s15  ;;  %p58_p5 = scmp.lt.s32.totalorder %s52_s15, %s52_s15 }
   0xb   :  { %p59_p6 = por %p58_p5, %p57_p4 }
   0xd   :  { %p60_p7 = pnand %p59_p6, %p53_p3 }
   0xf   :  { %63 = shalt.err (!%p60_p7)
}
  0x10   :  { %17 = dma.hbm_to_vmem [thread:$0]  %s126_s0, 256, %s15_s7, [#allocation3]  }
  0x11   :  { %86 = dma.done.wait [#allocation3], 256  }
  0x12   :  { %87 = vsyncadd [#allocation3], 4294967040  ;;  %s91_s18 = smov [#allocation5]   ;;  %v21_v0 = vld [vmem:[#allocation2] sm:$0xff]  ;;  %v22_v1 = vld [vmem:[#allocation2 + $0x8] sm:$0xff] }
  0x13   :  { %s31_s19 = sshll.u32 %s91_s18, 4  ;;  %23 = vst [vmem:[#allocation5] sm:$0xff] %v21_v0  ;;  %24 = vst [vmem:[#allocation5 + $0x8] sm:$0xff] %v22_v1  ;;  %s32_s19 = int_to_ptr.vmem [resolvable:$true] %s31_s19 }
  0x14   :  { %s64_s20 = scalar_lea.vmem %s32_s19, 256  ;;  %p69_p9 = scmp.lt.s32.totalorder %s32_s19, %s32_s19 }
  0x15   :  { %p65_p8 = scmp.ne.s32.totalorder %s32_s19, %s64_s20  ;;  %p70_p10 = scmp.lt.s32.totalorder %s64_s20, %s64_s20 }
  0x17   :  { %p71_p11 = por %p70_p10, %p69_p9 }
  0x19   :  { %p72_p12 = pnand %p71_p11, %p65_p8 }
  0x1b   :  { %75 = shalt.err (!%p72_p12)
}
  0x1c   :  { %s76_s0 = scalar_lea.hbm %s127_s1, 256 }
  0x1d   :  { %p77_p13 = scmp.ne.s32.totalorder %s127_s1, %s76_s0  ;;  %p80_p0 = scmp.lt.u32.totalorder %s76_s0, %s127_s1 }
  0x1f   :  { %p82_p1 = pnand %p80_p0, %p77_p13 }
  0x21   :  { %85 = shalt.err (!%p82_p1)
}
  0x22   :  { %34 = dma.vmem_to_hbm [thread:$0]  %s32_s19, 256, %s127_s1, [#allocation4]  }
  0x23   :  { %88 = dma.done.wait [#allocation4], 256  }
  0x24   :  { %89 = vsyncadd [#allocation4], 4294967040 }
  0x25   :  { %38 = vsyncpa [#allocation3], 1 }
  0x26   :  { %39 = vsyncpa [#allocation4], 1 }

</bundles_post_ra>
